<compile_context>
chip_gen: v6e
topology: v6e:2x2x1
jax: 0.10.0
libtpu: 0.0.40
codegen_flags: <defaults>
</compile_context>

<pallas_src>
import functools

import jax
import jax.numpy as jnp
from jax import lax
from jax.experimental import pallas as pl
from jax.experimental.pallas import tpu as pltpu


def _round_up(a: int, b: int) -> int:
    return ((a + b - 1) // b) * b


def _sepconv_kernel(x_ref, h_ref, w_ref, b_ref, o_ref, *, K, NB, L_TILE):
    """Fused depthwise + pointwise conv on one (NB, C_in, L_TILE) tile.

    x_ref : (NB, C_in, L_TILE)     aligned main input tile
    h_ref : (NB, C_in, 128)        right halo (first 128 cols of the next tile)
    w_ref : (C_out, K*C_in)        fused weights W[o, k*C_in+c] = w_pw[o,c]*w_dw[c,k]
    b_ref : (C_out, 1)  f32        fused bias    b = w_pw @ b_dw + b_pw
    o_ref : (NB, C_out, L_TILE)    lane-dense output tile
    """
    w = w_ref[...]          # (C_out, K*C_in), x dtype — loaded once per grid step
    bias = b_ref[...]       # (C_out, 1) f32   — load hoisted out of the batch loop

    def body(b, carry):
        xm = x_ref[b]                                        # (C_in, L_TILE)
        if K > 1:
            xf = jnp.concatenate([xm, h_ref[b]], axis=-1)    # (C_in, L_TILE + 128)
        else:
            xf = xm
        # im2col along channels: X_cat[k*C_in + c, l] = x[c, l + k]
        xcat = jnp.concatenate([xf[:, k:k + L_TILE] for k in range(K)], axis=0)
        # single MXU matmul, f32 accumulation (bf16 operands stay bf16)
        acc = jnp.dot(w, xcat, preferred_element_type=jnp.float32)   # (C_out, L_TILE)
        o_ref[b] = (acc + bias).astype(o_ref.dtype)                  # f32 epilogue
        return carry

    lax.fori_loop(0, NB, body, 0)


def separable_conv1d(x, w_dw, b_dw, w_pw, b_pw, *, padding=0,
                     l_tile=1024, max_nb=16):
    """x: (N, C_in, L) -> (N, C_out, L + 2*padding - K + 1).  Matches
    nn.Conv1d(groups=C_in) followed by nn.Conv1d(kernel_size=1)."""
    N, C_in, L = x.shape
    K = w_dw.shape[-1]
    C_out = w_pw.shape[0]
    L_out = L + 2 * padding - K + 1
    assert L_out > 0, "invalid conv geometry"
    assert K - 1 <= 128, "kernel_size > 129 not supported by the 128-wide halo"

    itemsize = jnp.dtype(x.dtype).itemsize
    sub = max(8, 32 // max(itemsize, 1))       # sublane granularity for this dtype
    cin_p = _round_up(C_in, sub)
    cout_p = _round_up(C_out, sub)

    # ---- per-generation VMEM budget (v7x: 64 MiB phys; v5e/v6e: 128 MiB) ----
    try:
        vmem_cap = int(pltpu.get_tpu_info().vmem_capacity_bytes)
    except Exception:
        vmem_cap = 64 * 1024 * 1024            # v7x-safe fallback
    vmem_limit = min(int(0.75 * vmem_cap), 96 * 1024 * 1024)
    budget = vmem_limit - 2 * 1024 * 1024      # headroom (weights/bias/compiler scratch)

    # ---- tile selection: lane-dense output tiles, VMEM-bounded ----
    L_TILE = _round_up(min(l_tile, _round_up(L_out, 128)), 128)

    def _vmem_bytes(nb, lt):
        # HBM<->VMEM blocks, double-buffered by the pipeline (padded dims)
        io = 2 * itemsize * nb * (cin_p * lt + cin_p * 128 + cout_p * lt)
        # kernel-internal temps: one batch element live at a time (fori_loop)
        tmp = itemsize * (cin_p * (lt + 128)                      # xf
                          + K * cin_p * lt                        # shifted views
                          + _round_up(K * C_in, sub) * lt)        # xcat
        tmp += 4 * 2 * _round_up(C_out, 8) * lt                   # f32 acc + epilogue
        return io + tmp

    while L_TILE > 128 and _vmem_bytes(1, L_TILE) > budget:
        L_TILE = _round_up(L_TILE // 2, 128)
    T = pl.cdiv(L_out, L_TILE)

    # ---- batch blocking: amortize per-step overhead within the VMEM budget ----
    NB = 1
    while NB < min(max_nb, N) and _vmem_bytes(NB + 1, L_TILE) <= budget:
        NB += 1
    # keep >= 2 grid steps per TensorCore (v7x: 2 TCs share the parallel grid)
    while NB > 1 and pl.cdiv(N, NB) * T < 4:
        NB -= 1
    N_pad = pl.cdiv(N, NB) * NB

    # ---- one zero-pad: conv padding + tile round-up + 128-wide right halo ----
    total_L = T * L_TILE + 128
    x_p = jnp.pad(x, ((0, N_pad - N), (0, 0), (padding, total_L - L - padding)))
    # TODO(synk): the zero-pad is still one extra HBM read+write of x; a manual-DMA
    # (memory_space=pl.ANY) variant with in-kernel boundary handling would remove it.

    # ---- fold depthwise into the 1x1 pointwise (exact in f32) ----
    w_dw2 = w_dw.reshape(C_in, K).astype(jnp.float32)             # (C_in, K)
    w_pw2 = w_pw.reshape(C_out, C_in).astype(jnp.float32)         # (C_out, C_in)
    w_cat = (w_pw2[:, None, :] * w_dw2.T[None, :, :]).reshape(C_out, K * C_in)
    w_cat = w_cat.astype(x.dtype)          # bf16 stays bf16 on the MXU (f32 acc)
    b_cat = (w_pw2 @ b_dw.astype(jnp.float32).reshape(C_in, 1)
             + b_pw.astype(jnp.float32).reshape(C_out, 1))        # (C_out, 1) f32

    kernel = functools.partial(_sepconv_kernel, K=K, NB=NB, L_TILE=L_TILE)
    lt_blocks = L_TILE // 128

    out = pl.pallas_call(
        kernel,
        out_shape=jax.ShapeDtypeStruct((N_pad, C_out, T * L_TILE), x.dtype),
        grid_spec=pltpu.PrefetchScalarGridSpec(
            num_scalar_prefetch=0,
            grid=(N_pad // NB, T),
            in_specs=[
                # aligned, non-overlapping main tile
                pl.BlockSpec((NB, C_in, L_TILE), lambda n, t: (n, 0, t)),
                # 128-wide right halo = head of the next tile (second view of x_p)
                pl.BlockSpec((NB, C_in, 128),
                             lambda n, t: (n, 0, (t + 1) * lt_blocks)),
                pl.BlockSpec((C_out, K * C_in), lambda n, t: (0, 0)),
                pl.BlockSpec((C_out, 1), lambda n, t: (0, 0)),
            ],
            out_specs=pl.BlockSpec((NB, C_out, L_TILE), lambda n, t: (n, 0, t)),
        ),
        compiler_params=pltpu.CompilerParams(
            dimension_semantics=("parallel", "parallel"),
            vmem_limit_bytes=vmem_limit),
    )(x_p, x_p, w_cat, b_cat)

    return out[:N, :, :L_out]


def _reference(x, w_dw, b_dw, w_pw, b_pw, padding):
    """Pure-JAX reference matching PyTorch Conv1d(groups=C_in) + Conv1d(k=1)."""
    N, C_in, L = x.shape
    K = w_dw.shape[-1]
    xp = jnp.pad(x, ((0, 0), (0, 0), (padding, padding)))
    L_out = L + 2 * padding - K + 1
    y = jnp.zeros((N, C_in, L_out), dtype=jnp.float32)
    for k in range(K):
        y = y + xp[:, :, k:k + L_out] * w_dw[:, 0, k][None, :, None]
    y = y + b_dw[None, :, None]
    z = jnp.einsum('oc,ncl->nol', w_pw[:, :, 0], y) + b_pw[None, :, None]
    return z.astype(x.dtype)


if __name__ == "__main__":
    key = jax.random.PRNGKey(0)

    # --- small test consistent with the module: (N, C_in, L) = (2, 4, 16) ---
    N, C_in, C_out, L, K, P = 2, 4, 8, 16, 3, 1
    k1, k2, k3, k4, k5, key = jax.random.split(key, 6)
    x = jax.random.normal(k1, (N, C_in, L), dtype=jnp.float32)
    w_dw = jax.random.normal(k2, (C_in, 1, K), dtype=jnp.float32) * 0.5
    b_dw = jax.random.normal(k3, (C_in,), dtype=jnp.float32) * 0.1
    w_pw = jax.random.normal(k4, (C_out, C_in, 1), dtype=jnp.float32) * 0.5
    b_pw = jax.random.normal(k5, (C_out,), dtype=jnp.float32) * 0.1

    out = separable_conv1d(x, w_dw, b_dw, w_pw, b_pw, padding=P)
    out = jax.block_until_ready(out)
    ref = _reference(x, w_dw, b_dw, w_pw, b_pw, P)
    assert out.shape == (N, C_out, L + 2 * P - K + 1), out.shape
    assert jnp.allclose(out, ref, atol=1e-4, rtol=1e-4), "mismatch (small case)"

    # --- moderate f32 test exercising L tiling (T>1), halo spec, NB>1, N padding ---
    N2, C_in2, C_out2, L2, K2, P2 = 4, 8, 16, 700, 5, 2
    k1, k2, k3, k4, k5, key = jax.random.split(key, 6)
    x2 = jax.random.normal(k1, (N2, C_in2, L2), dtype=jnp.float32)
    w_dw2 = jax.random.normal(k2, (C_in2, 1, K2), dtype=jnp.float32) * 0.5
    b_dw2 = jax.random.normal(k3, (C_in2,), dtype=jnp.float32) * 0.1
    w_pw2 = jax.random.normal(k4, (C_out2, C_in2, 1), dtype=jnp.float32) * 0.5
    b_pw2 = jax.random.normal(k5, (C_out2,), dtype=jnp.float32) * 0.1

    out2 = separable_conv1d(x2, w_dw2, b_dw2, w_pw2, b_pw2, padding=P2, l_tile=256)
    out2 = jax.block_until_ready(out2)
    ref2 = _reference(x2, w_dw2, b_dw2, w_pw2, b_pw2, P2)
    assert out2.shape == (N2, C_out2, L2 + 2 * P2 - K2 + 1), out2.shape
    assert jnp.allclose(out2, ref2, atol=1e-4, rtol=1e-4), "mismatch (tiled case)"

    # --- bf16 activation test: operands stay bf16 on the MXU, f32 accumulation ---
    N3, C_in3, C_out3, L3, K3, P3 = 3, 8, 8, 200, 3, 1
    k1, k2, k3, k4, k5, key = jax.random.split(key, 6)
    x3 = jax.random.normal(k1, (N3, C_in3, L3), dtype=jnp.float32).astype(jnp.bfloat16)
    w_dw3 = jax.random.normal(k2, (C_in3, 1, K3), dtype=jnp.float32) * 0.5
    b_dw3 = jax.random.normal(k3, (C_in3,), dtype=jnp.float32) * 0.1
    w_pw3 = jax.random.normal(k4, (C_out3, C_in3, 1), dtype=jnp.float32) * 0.5
    b_pw3 = jax.random.normal(k5, (C_out3,), dtype=jnp.float32) * 0.1

    out3 = separable_conv1d(x3, w_dw3, b_dw3, w_pw3, b_pw3, padding=P3)
    out3 = jax.block_until_ready(out3)
    ref3 = _reference(x3, w_dw3, b_dw3, w_pw3, b_pw3, P3)
    assert out3.shape == (N3, C_out3, L3 + 2 * P3 - K3 + 1), out3.shape
    assert jnp.allclose(out3.astype(jnp.float32), ref3.astype(jnp.float32),
                        atol=2e-1, rtol=5e-2), "mismatch (bf16 case)"

    print("KERNEL_OK")
</pallas_src>

<mosaic_0001>
module attributes {stable_mosaic.version = 11 : i64} {
  func.func @_sepconv_kernel(%arg0: i32, %arg1: i32, %arg2: memref<1x4x128xf32, #tpu.memory_space<vmem>>, %arg3: memref<1x4x128xf32, #tpu.memory_space<vmem>>, %arg4: memref<8x12xf32, #tpu.memory_space<vmem>>, %arg5: memref<8x1xf32, #tpu.memory_space<vmem>>, %arg6: memref<1x8x128xf32, #tpu.memory_space<vmem>>) attributes {dimension_semantics = [#tpu.dimension_semantics<parallel>, #tpu.dimension_semantics<parallel>], iteration_bounds = array<i64: 2, 1>, scalar_prefetch = 0 : i64, scratch_operands = 0 : i64, tpu.core_type = #tpu.core_type<tc>, window_params = [{transform_indices = @transform_0, window_bounds = array<i64: 1, 4, 128>}, {transform_indices = @transform_1, window_bounds = array<i64: 1, 4, 128>}, {pipeline_mode = #tpu.pipeline_mode<synchronous>, transform_indices = @transform_2, window_bounds = array<i64: 8, 12>}, {pipeline_mode = #tpu.pipeline_mode<synchronous>, transform_indices = @transform_3, window_bounds = array<i64: 8, 1>}, {transform_indices = @transform_4, window_bounds = array<i64: 1, 8, 128>}]} {
    %c0 = arith.constant 0 : index
    %c0_0 = arith.constant 0 : index
    %0 = vector.load %arg4[%c0, %c0_0] : memref<8x12xf32, #tpu.memory_space<vmem>>, vector<8x12xf32>
    %c0_1 = arith.constant 0 : index
    %c0_2 = arith.constant 0 : index
    %1 = vector.load %arg5[%c0_1, %c0_2] : memref<8x1xf32, #tpu.memory_space<vmem>>, vector<8x1xf32>
    %c0_i32 = arith.constant 0 : i32
    %2 = arith.index_cast %c0_i32 : i32 to index
    %c0_3 = arith.constant 0 : index
    %c0_4 = arith.constant 0 : index
    %3 = vector.load %arg2[%2, %c0_3, %c0_4] : memref<1x4x128xf32, #tpu.memory_space<vmem>>, vector<1x4x128xf32>
    %4 = vector.shape_cast %3 : vector<1x4x128xf32> to vector<4x128xf32>
    %5 = arith.index_cast %c0_i32 : i32 to index
    %c0_5 = arith.constant 0 : index
    %c0_6 = arith.constant 0 : index
    %6 = vector.load %arg3[%5, %c0_5, %c0_6] : memref<1x4x128xf32, #tpu.memory_space<vmem>>, vector<1x4x128xf32>
    %7 = vector.shape_cast %6 : vector<1x4x128xf32> to vector<4x128xf32>
    %8 = tpu.concatenate %4, %7 in 1 : vector<4x128xf32>, vector<4x128xf32> -> vector<4x256xf32>
    %9 = vector.extract_strided_slice %8 {offsets = [0, 0], sizes = [4, 128], strides = [1, 1]} : vector<4x256xf32> to vector<4x128xf32>
    %10 = vector.extract_strided_slice %8 {offsets = [0, 1], sizes = [4, 128], strides = [1, 1]} : vector<4x256xf32> to vector<4x128xf32>
    %11 = vector.extract_strided_slice %8 {offsets = [0, 2], sizes = [4, 128], strides = [1, 1]} : vector<4x256xf32> to vector<4x128xf32>
    %12 = tpu.concatenate %9, %10, %11 in 0 : vector<4x128xf32>, vector<4x128xf32>, vector<4x128xf32> -> vector<12x128xf32>
    %cst = arith.constant dense<0.000000e+00> : vector<8x128xf32>
    %13 = tpu.matmul %0, %12, %cst {dimension_numbers = #tpu.dot_dimension_numbers<[1], [0], [0], [1], [0, 0, 1, 1], [], []>} : vector<8x12xf32>, vector<12x128xf32>, vector<8x128xf32> -> vector<8x128xf32>
    %14 = vector.broadcast %1 : vector<8x1xf32> to vector<8x128xf32>
    %15 = arith.addf %13, %14 : vector<8x128xf32>
    %16 = arith.index_cast %c0_i32 : i32 to index
    %c0_7 = arith.constant 0 : index
    %c0_8 = arith.constant 0 : index
    %17 = vector.load %arg6[%16, %c0_7, %c0_8] : memref<1x8x128xf32, #tpu.memory_space<vmem>>, vector<1x8x128xf32>
    %18 = vector.shape_cast %17 : vector<1x8x128xf32> to vector<8x128xf32>
    %19 = vector.shape_cast %15 : vector<8x128xf32> to vector<1x8x128xf32>
    tpu.vector_store %arg6[%16, %c0_7, %c0_8], %19 {strides = array<i32>} : memref<1x8x128xf32, #tpu.memory_space<vmem>>, vector<1x8x128xf32>,
    %c1_i32 = arith.constant 1 : i32
    return
  }
  func.func @transform_0(%arg0: i32, %arg1: i32) -> (i32, i32, i32) {
    %c0_i32 = arith.constant 0 : i32
    %c0_i32_0 = arith.constant 0 : i32
    return %arg0, %c0_i32, %arg1 : i32, i32, i32
  }
  func.func @transform_1(%arg0: i32, %arg1: i32) -> (i32, i32, i32) {
    %c1_i32 = arith.constant 1 : i32
    %0 = arith.addi %arg1, %c1_i32 : i32
    %c1_i32_0 = arith.constant 1 : i32
    %1 = arith.muli %0, %c1_i32_0 : i32
    %c0_i32 = arith.constant 0 : i32
    %c0_i32_1 = arith.constant 0 : i32
    return %arg0, %c0_i32, %1 : i32, i32, i32
  }
  func.func @transform_2(%arg0: i32, %arg1: i32) -> (i32, i32) {
    %c0_i32 = arith.constant 0 : i32
    %c0_i32_0 = arith.constant 0 : i32
    %c0_i32_1 = arith.constant 0 : i32
    return %c0_i32, %c0_i32_0 : i32, i32
  }
  func.func @transform_3(%arg0: i32, %arg1: i32) -> (i32, i32) {
    %c0_i32 = arith.constant 0 : i32
    %c0_i32_0 = arith.constant 0 : i32
    %c0_i32_1 = arith.constant 0 : i32
    return %c0_i32, %c0_i32_0 : i32, i32
  }
  func.func @transform_4(%arg0: i32, %arg1: i32) -> (i32, i32, i32) {
    %c0_i32 = arith.constant 0 : i32
    %c0_i32_0 = arith.constant 0 : i32
    return %arg0, %c0_i32, %arg1 : i32, i32, i32
  }
}

</mosaic_0001>

<bundles_post_ra>
// kernel: tpu_custom_call.1
= control target key start
LH: loop header
LB: loop body
LE: loop exit
PB: predicated region body
PF: predicated region fallthrough
CT: control target
= control target key end

     0   :  { %s958_s0 = inlined_call_operand.hbm [shape: f32[2,4,256], index: 0, kind: input, shape index: {}]   ;;  %s959_s1 = inlined_call_operand.hbm [shape: f32[2,4,256], index: 1, kind: input, shape index: {}]   ;;  %s960_s2 = inlined_call_operand.vmem [shape: f32[8,12], index: 2, kind: input, shape index: {}]   ;;  %s961_s3 = inlined_call_operand.vmem [shape: f32[8,1], index: 3, kind: input, shape index: {}]   ;;  %s962_s4 = inlined_call_operand.hbm [shape: f32[2,8,128], index: 4, kind: output, shape index: {}]  }
   0x1   :  { %963 = sst [smem:[#allocation11_spill]] %s958_s0 }
   0x2   :  { %9 = vsyncpa [#allocation3], 0 }
   0x3   :  { %11 = vsyncpa [#allocation3 + $0x1], 0 }
   0x4   :  { %12 = vsyncpa [#allocation6], 0 }
   0x5   :  { %14 = vsyncpa [#allocation6 + $0x1], 0 }
   0x6   :  { %15 = vsyncpa [#allocation4], 0 }
   0x7   :  { %17 = vsyncpa [#allocation4 + $0x1], 0  ;;  %s784_s15 = smov 0   ;;  %s786_s16 = smov 0  }
   0x8   :  { %s788_s17 = smov 0   ;;  %s790_s18 = smov 0  }
   0x9   :  { %s792_s19 = smov 0   ;;  %s794_s20 = smov 0  }
   0xa LB: > { %s503_s21 = sadd.s32 4294967295, %s749_s20   ;;  %s504_s22 = sadd.s32 4294967294, %s749_s20   ;;  %s749_s20 = sphi %s794_s20, %s23_s20   ;;  %s745_s19 = sphi %s792_s19, %s976_s19   ;;  %s741_s18 = sphi %s790_s18, %s975_s18   ;;  %s737_s17 = sphi %s788_s17, %s974_s17   ;;  %s733_s16 = sphi %s786_s16, %s973_s16   ;;  %s729_s15 = sphi %s784_s15, %s972_s15  }
   0xb   : > { %s35_s23 = sadd.s32 1, %s745_s19  ;;  %s44_s24 = sadd.s32 1, %s737_s17 }
   0xc   : > { %p37_p0 = scmp.ge.s32.totalorder %s35_s23, 2  ;;  %p51_p1 = scmp.ne.s32.totalorder %s737_s17, %s733_s16 }
   0xd   : > { %p52_p2 = scmp.eq.s32.totalorder %s749_s20, 0  ;;  %p57_p3 = scmp.ne.s32.totalorder %s733_s16, %s729_s15 }
   0xe   : > { %s978_s23 = smov (%p37_p0, %s35_s23), 0  ;;  %p58_p5 = scmp.eq.s32.totalorder %s503_s21, 0 }
   0xf   : > { %p825_p4 = por %p52_p2, %p51_p1  ;;  %s39_s26 = ssub.s32 %s745_s19, %s978_s23 }
  0x10   : > { %p155_p6 = scmp.eq.s32.totalorder %s503_s21, 1  ;;  %p42_p7 = scmp.eq.s32.totalorder %s39_s26, 0 }
  0x11   : > { %p831_p8 = por %p58_p5, %p57_p3  ;;  %p161_p10 = scmp.eq.s32.totalorder %s504_s22, 1 }
  0x12   : > { %p835_p9 = por %p155_p6, %p51_p1  ;;  %p552_p13 = scmp.lt.s32.totalorder %s749_s20, 2 }
  0x13   : > { %s840_s29 = scalar_select %p42_p7, %s737_s17, %s44_s24  }
  0x14   : > { %p842_p11 = por %p161_p10, %p57_p3  ;;  %s849_s5 = sand.u32 1, %s737_s17  }
  0x15   : > { %s507_s6 = sshll.u32 %s849_s5, 2  ;;  %s523_s7 = sshll.u32 %s745_s19, 7 }
  0x16   : > { %s968_s0 = sld [smem:[#allocation11_spill]]  ;;  %s191_s11 = scalar_lea.vmem [#allocation2], %s507_s6 }
  0x17   : > { %s200_s12 = sshll.u32 %s191_s11, 4  ;;  %p858_p0 = pnand %p552_p13, %p825_p4  ;;  %s201_s12 = int_to_ptr.vmem [resolvable:$true] %s200_s12 }
  0x18   : > { %p513_p1 = scmp.ge.s32.totalorder %s749_s20, 1  ;;  %p226_p2 = scmp.lt.s32.totalorder %s749_s20, 3 }
  0x19   : > { %s188_s14 = scalar_lea.sflag [#allocation3], %s849_s5  ;;  %p610_p3 = pneg %p858_p0 }
  0x1a   : > { %s621_s21 = scalar_lea.vmem %s201_s12, 64  ;;  %s751_s22 = smov [#allocation2]  }
  0x1b   : > { %p622_p5 = scmp.ne.s32.totalorder %s201_s12, %s621_s21  ;;  %s626_s24 = sshll.u32 %s751_s22, 4  ;;  %s627_s24 = int_to_ptr.vmem [resolvable:$false] %s626_s24 }
  0x1c   : > { %s198_s10 = scalar_lea.hbm %s968_s0, %s523_s7  ;;  %s628_s25 = scalar_lea.vmem %s627_s24, 128 }
  0x1d   : > { %p624_p6 = pnand %p622_p5, %p610_p3  ;;  %p629_p4 = scmp.lt.s32.totalorder %s201_s12, %s627_s24 }
  0x1e   : > { %p630_p10 = scmp.lt.s32.totalorder %s628_s25, %s621_s21 }
  0x1f   : > { %p625_p7 = pneg %p624_p6 }
  0x20   : > { %p631_p13 = por %p630_p10, %p629_p4 }
  0x22   : > { %p632_p12 = pnand %p631_p13, %p625_p7 }
  0x24   : > { %635 = shalt.err (!%p632_p12)
}
  0x25   : > { %544 = dma.hbm_to_vmem [thread:$0]  (!%p858_p0), %s198_s10, 64, %s201_s12, %s188_s14  }
  0x26   : > { %p876_p5 = pnand %p513_p1, %p226_p2  ;;  %s436_s11 = scalar_lea.hbm %s959_s1, %s523_s7 }
  0x27   : > { %s211_s21 = scalar_lea.vmem [#allocation5], %s507_s6  ;;  %s437_s24 = scalar_lea.hbm %s436_s11, 64 }
  0x28   : > { %s221_s22 = sshll.u32 %s211_s21, 4  ;;  %s208_s25 = scalar_lea.sflag [#allocation6], %s849_s5  ;;  %s222_s22 = int_to_ptr.vmem [resolvable:$true] %s221_s22 }
  0x29   : > { %s649_s0 = scalar_lea.vmem %s222_s22, 64  ;;  %s752_s10 = smov [#allocation5]  }
  0x2a   : > { %p650_p12 = scmp.ne.s32.totalorder %s222_s22, %s649_s0  ;;  %s654_s12 = sshll.u32 %s752_s10, 4  ;;  %s655_s12 = int_to_ptr.vmem [resolvable:$false] %s654_s12 }
  0x2b   : > { %s656_s14 = scalar_lea.vmem %s655_s12, 128  ;;  %p657_p1 = scmp.lt.s32.totalorder %s222_s22, %s655_s12 }
  0x2c   : > { %p652_p6 = pnand %p650_p12, %p610_p3  ;;  %p658_p2 = scmp.lt.s32.totalorder %s656_s14, %s649_s0 }
  0x2e   : > { %p653_p7 = pneg %p652_p6  ;;  %p659_p4 = por %p658_p2, %p657_p1 }
  0x30   : > { %p660_p10 = pnand %p659_p4, %p653_p7 }
  0x32   : > { %663 = shalt.err (!%p660_p10)
}
  0x33   : > { %547 = dma.hbm_to_vmem [thread:$0]  (!%p858_p0), %s437_s24, 64, %s222_s22, %s208_s25  }
  0x34   : > { %230 = sbr.rel (%p876_p5) target bundleno = 394 (0x18a), region = 36  ;;  %s892_s5 = sand.u32 (!%p876_p5), 1, %s733_s16  }
  0x35   : > { %s514_s6 = sshll.u32 (!%p876_p5), %s892_s5, 2  ;;  %s233_s7 = scalar_lea.sflag (!%p876_p5), [#allocation3], %s892_s5 }
  0x36   : > { %s236_s8 = scalar_lea.vmem (!%p876_p5), [#allocation2], %s514_s6 }
  0x39   : > { %716 = dma.done.wait (%p831_p8), %s233_s7, 64  }
  0x3a   : > { %718 = vsyncadd (%p831_p8), %s233_s7, 4294967232  ;;  %s242_s0 = scalar_lea.sflag [#allocation6], %s892_s5  ;;  %s245_s13 = scalar_lea.vmem [#allocation5], %s514_s6 }
  0x3b   : > { %720 = dma.done.wait (%p831_p8), %s242_s0, 64  }
  0x3c   : > { %722 = vsyncadd (%p831_p8), %s242_s0, 4294967232  ;;  %v753_v0 = vmov 0.0   ;;  %vm754_vm0 = vmmov 0   ;;  %v755_v1 = vmov 0   ;;  %v278_v2 = vld [vmem:[%s236_s8] sm:$0xf] }
  0x3d   : > { %528 = vmatprep.subr.mxu0 %v753_v0  ;;  %532 = vmatprep.mubr.msk.f32.mxu0 %vm754_vm0, %v753_v0  ;;  %v279_v3 = vld [vmem:[%s245_s13] sm:$0xf]  ;;  %s756_s26 = smov 126   ;;  %v282_v4 = vrot.slane %v278_v2, 4  ;;  %s757_s9 = smov 127   ;;  %v277_v6 = vld [vmem:[%s961_s3] sm:$0xff] }
  0x3e   : > { %607 = vset.pattern.permute.xlu0 %v755_v1  ;;  %v283_v5 = vrot.slane %v279_v3, 4  ;;  %vm295_vm1 = vcmask 1031168   ;;  %vm297_vm2 = vcmask 1043456   ;;  %vm288_vm3 = vcmask 1039360   ;;  %v276_v13 = vld [vmem:[%s960_s2] sm:$0xff]  ;;  %s516_s24 = sshll.u32 %s892_s5, 3 }
  0x3f   : > { %291 = vrot.lane.b32.xlu0 %v278_v2, %s756_s26  ;;  %284 = vrot.lane.b32.xlu1 %v282_v4, %s757_s9  ;;  %vm304_vm4 = vcmask 97280   ;;  %s520_s25 = sshll.u32 %s741_s18, 7  ;;  %s274_s10 = scalar_lea.vmem [#allocation7], %s516_s24 }
  0x40   : > { %s396_s12 = sshll.u32 %s274_s10, 4  ;;  %s916_s7 = scalar_lea.hbm %s962_s4, %s520_s25  ;;  %s397_s12 = int_to_ptr.vmem [resolvable:$true] %s396_s12 }
  0x41   : > { %s382_s8 = scalar_lea.sflag [#allocation4], %s892_s5  ;;  %s665_s0 = scalar_lea.vmem %s397_s12, 128 }
  0x42   : > { %p666_p8 = scmp.ne.s32.totalorder %s397_s12, %s665_s0  ;;  %s758_s13 = smov [#allocation7]  }
  0x43   : > { %293 = vrot.lane.b32.xlu0 %v279_v3, %s756_s26  ;;  %286 = vrot.lane.b32.xlu1 %v283_v5, %s757_s9  ;;  %s669_s18 = sshll.u32 %s758_s13, 4  ;;  %s670_s18 = int_to_ptr.vmem [resolvable:$false] %s669_s18 }
  0x44   : > { %p667_p0 = pnand %p666_p8, %p835_p9  ;;  %s671_s26 = scalar_lea.vmem %s670_s18, 256 }
  0x45   : > { %p672_p13 = scmp.lt.s32.totalorder %s397_s12, %s670_s18  ;;  %p673_p5 = scmp.lt.s32.totalorder %s671_s26, %s665_s0 }
  0x46   : > { %p668_p3 = pneg %p667_p0 }
  0x47   : > { %301 = vperm.xlu0 %607, %v277_v6   ;;  %p674_p12 = por %p673_p5, %p672_p13 }
  0x49   : > { %p675_p6 = pnand %p674_p12, %p668_p3 }
  0xb1   : > { %v292_v7 = vpop.permute.xlu0 %291  ;;  %v285_v8 = vpop.permute.xlu1 %284 }
  0xb5   : > { %v294_v9 = vpop.permute.xlu0 %293  ;;  %v287_v11 = vpop.permute.xlu1 %286 }
  0xb6   : > { %v296_v10 = vsel %vm295_vm1, %v292_v7, %v294_v9  ;;  %v289_v12 = vsel %vm288_vm3, %v285_v8, %v287_v11 }
  0xb7   : > { %529 = vmatpush3.msk.msra.mxu0 %vm297_vm2, %v296_v10  ;;  %v298_v14 = vsel %vm297_vm2, %v278_v2, %v289_v12 }
  0xb8   : > { %530 = vmatprep.subr.mxu0 %v753_v0 }
  0xb9   : > { %531 = vmatpush3.msra.mxu0 %v298_v14 }
  0xba   : > { %533 = vmatmul.mubr.msk.f32.vlgmr.msra.gmra.mxu0 %vm304_vm4, %v276_v13 }
  0xc2   : > { %v302_v15 = vpop.permute.xlu0 %301 }
 0x17a   : > { %v376_v16 = vpop.f32.mrf.mxu0 }
 0x17b   : > { %v377_v17 = vadd.f32 %v376_v16, %v302_v15 }
 0x17c   : > { %v534_v18 = vpop.f32.mrf.mxu0 }
 0x17d   : > { %380 = vst [vmem:[%s274_s10] sm:$0xff] %v377_v17 }
 0x17e   : > { %678 = shalt.err (!%p675_p6)
}
 0x17f   : > { %s679_s9 = scalar_lea.hbm %s916_s7, 128  ;;  %s683_s21 = scalar_lea.hbm %s962_s4, 256 }
 0x180   : > { %p680_p7 = scmp.ne.s32.totalorder %s916_s7, %s679_s9  ;;  %p684_p4 = scmp.lt.s32.totalorder %s916_s7, %s962_s4 }
 0x181   : > { %p685_p10 = scmp.lt.s32.totalorder %s683_s21, %s679_s9 }
 0x182   : > { %p681_p1 = pnand %p680_p7, %p835_p9 }
 0x183   : > { %p686_p8 = por %p685_p10, %p684_p4 }
 0x184   : > { %p682_p2 = pneg %p681_p1 }
 0x186   : > { %p687_p0 = pnand %p686_p8, %p682_p2 }
 0x188   : > { %690 = shalt.err (!%p687_p0)
}
 0x189   : > { %539 = dma.vmem_to_hbm [thread:$0]  (%p835_p9), %s397_s12, 128, %s916_s7, %s382_s8  }
 0x18a PF: > { %s408_s24 = sand.u32 1, %s729_s15   ;;  %p971_p3 = scmp.ge.s32.totalorder %s749_s20, 2 }
 0x18b   : > { %s409_s25 = scalar_lea.sflag [#allocation4], %s408_s24 }
 0x18c   : > { %p549_p13 = pnand %p971_p3, %p842_p11 }
 0x18e   : > { %p550_p5 = pneg %p549_p13 }
 0x190   : > { %724 = dma.done.wait (%p550_p5), %s409_s25, 128  }
 0x191   : > { %726 = vsyncadd (%p550_p5), %s409_s25, 4294967168  ;;  %s23_s20 = sadd.s32 1, %s749_s20   ;;  %s972_s15 = smov %s733_s16 }
 0x192   : > { %p20_p12 = scmp.ge.s32.totalorder %s23_s20, 4   ;;  %s973_s16 = smov %s737_s17 }
 0x193   : > { %s974_s17 = smov %s840_s29  ;;  %s975_s18 = smov %s745_s19 }
 0x194   : > { %s976_s19 = smov %s978_s23  ;;  %22 = sbr.rel (!%p20_p12) target bundleno = 10 (0xa), region = 94 }
 0x199   :  { %414 = vsyncpa [#allocation3], 1 }
 0x19a   :  { %416 = vsyncpa [#allocation3 + $0x1], 1 }
 0x19b   :  { %417 = vsyncpa [#allocation6], 1 }
 0x19c   :  { %419 = vsyncpa [#allocation6 + $0x1], 1 }
 0x19d   :  { %420 = vsyncpa [#allocation4], 1 }
 0x19e   :  { %422 = vsyncpa [#allocation4 + $0x1], 1 }

</bundles_post_ra>
